<compile_context>
chip_gen: v7x
topology: tpu7x:2x2x1
jax: 0.10.0
libtpu: 0.0.40
codegen_flags: <defaults>
</compile_context>

<pallas_src>
import functools

import jax
import jax.numpy as jnp
from jax.experimental import pallas as pl
from jax.experimental.pallas import tpu as pltpu


# ----------------------------------------------------------------------------
# helpers
# ----------------------------------------------------------------------------
def _round_up(x, m):
    return (x + m - 1) // m * m


def _pick_tile(size, candidates):
    for c in candidates:
        if size >= c and size % c == 0:
            return c
    return size  # fall back to the full dimension (always a legal block)


def _pad2(a, rows, cols):
    return jnp.pad(a, ((0, rows - a.shape[0]), (0, cols - a.shape[1])))


_PROP_VMEM_BUDGET = 48 * (1 << 20)  # keep under v7x's 64 MiB physical VMEM


def _choose_prop_tiles(npad, cp):
    """Largest (tm, tk) from the raised candidate lists that fits the VMEM budget.

    Footprint model (per grid step, one branch at a time thanks to the stacked axis):
      S tile double-buffered + resident H (double-buffered, constant index -> DMA'd once)
      + output tile double-buffered + f32 accumulator scratch.
    """
    resident_h = 2 * npad * cp * 2  # bf16, 2 buffers
    best = None
    for tm in (1024, 512, 256, 128):
        if npad % tm:
            continue
        for tk in (2048, 1024, 512, 256, 128):
            if npad % tk:
                continue
            fp = resident_h + 2 * tm * tk * 2 + 2 * tm * cp * 2 + tm * cp * 4
            if fp <= _PROP_VMEM_BUDGET:
                return tm, tk, fp
            if best is None:
                best = (tm, tk, fp)
    if best is not None:
        return best
    tm = tk = 128
    fp = resident_h + 2 * tm * tk * 2 + 2 * tm * cp * 2 + tm * cp * 4
    return tm, tk, fp


# ----------------------------------------------------------------------------
# Kernel 1: one SGConv propagation step for both branches (stacked on axis 0):
#           o[b] = S[b] @ H[b]      (tiled rows x reduction, f32 accumulator,
#                                    H fully VMEM-resident per branch)
# ----------------------------------------------------------------------------
def _propagate_kernel(s_ref, h_ref, o_ref, acc_ref, *, tk):
    k = pl.program_id(2)

    @pl.when(k == 0)
    def _():
        acc_ref[...] = jnp.zeros_like(acc_ref)

    start = pl.multiple_of(k * tk, tk)
    acc_ref[...] += jnp.dot(s_ref[...], h_ref[pl.ds(start, tk), :],
                            preferred_element_type=jnp.float32)

    @pl.when(k == pl.num_programs(2) - 1)
    def _():
        o_ref[...] = acc_ref[...].astype(o_ref.dtype)


def _propagate_stacked(s, h):
    """s: (2, npad, npad) bf16, h: (2, npad, cp) bf16 -> (2, npad, cp) bf16."""
    _, npad, _ = s.shape
    cp = h.shape[2]
    tm, tk, footprint = _choose_prop_tiles(npad, cp)
    grid = (2, npad // tm, npad // tk)

    vmem_limit = int(min(100 * (1 << 20),
                         max(32 * (1 << 20), footprint + 8 * (1 << 20))))

    cost = pl.CostEstimate(
        flops=int(4 * npad * npad * cp),                       # both branches
        transcendentals=0,
        bytes_accessed=int(2 * npad * npad * 2                 # S (both branches, bf16)
                           + 2 * npad * cp * 2                 # H read once per branch
                           + 2 * npad * cp * 2),               # output writeback
    )

    return pl.pallas_call(
        functools.partial(_propagate_kernel, tk=tk),
        out_shape=jax.ShapeDtypeStruct((2, npad, cp), jnp.bfloat16),
        grid_spec=pltpu.PrefetchScalarGridSpec(
            num_scalar_prefetch=0,
            grid=grid,
            in_specs=[
                # S tile, streamed
                pl.BlockSpec((pl.Squeezed(), tm, tk), lambda b, i, k: (b, i, k)),
                # H: full branch slab, constant block index -> DMA'd once per branch
                pl.BlockSpec((pl.Squeezed(), npad, cp), lambda b, i, k: (b, 0, 0)),
            ],
            out_specs=pl.BlockSpec((pl.Squeezed(), tm, cp), lambda b, i, k: (b, i, 0)),
            scratch_shapes=[pltpu.VMEM((tm, cp), jnp.float32)],
        ),
        compiler_params=pltpu.CompilerParams(
            dimension_semantics=("parallel", "parallel", "arbitrary"),
            vmem_limit_bytes=vmem_limit,
        ),
        cost_estimate=cost,
    )(s, h)


# ----------------------------------------------------------------------------
# Kernel 2 (head, gathered rows only):
#   y(h1,h2) = LeakyReLU(h2 W + b) - LeakyReLU(h1 W + b)      ('minus' fusion)
#   d        = y(left rows) - y(right rows)
#   t_hat    = softmax(-(d)^2, -1) @ W_dec + b_dec             (lane-dense 128 out)
# ----------------------------------------------------------------------------
def _head_kernel(h1l_ref, h2l_ref, h1r_ref, h2r_ref,
                 we_ref, be_ref, wd_ref, bd_ref, out_ref, *, slope):
    we = we_ref[...]            # bf16 (cp, hd)
    be = be_ref[...]            # f32  (1, hd)

    def enc(h_ref):
        y = jnp.dot(h_ref[...], we, preferred_element_type=jnp.float32) + be
        return jnp.where(y >= 0, y, slope * y)      # LeakyReLU(negative_slope=0.1)

    yl = enc(h2l_ref) - enc(h1l_ref)                # fused 'minus', left rows
    yr = enc(h2r_ref) - enc(h1r_ref)                # fused 'minus', right rows
    d = yl - yr
    logits = -(d * d)
    m = jnp.max(logits, axis=-1, keepdims=True)
    e = jnp.exp(logits - m)
    p = e * pl.reciprocal(jnp.sum(e, axis=-1, keepdims=True), approx=True)
    out_ref[...] = (
        jnp.dot(p.astype(jnp.bfloat16), wd_ref[...],
                preferred_element_type=jnp.float32) + bd_ref[...]
    )


def _head(h1l, h2l, h1r, h2r, we, be, wd, bd, *, slope):
    m, cp = h1l.shape
    hd = we.shape[1]
    n_out = wd.shape[1]
    mpad = _round_up(max(m, 8), 8)

    h1lp = _pad2(h1l, mpad, cp)
    h2lp = _pad2(h2l, mpad, cp)
    h1rp = _pad2(h1r, mpad, cp)
    h2rp = _pad2(h2r, mpad, cp)
    wdp = _pad2(wd, hd, 128).astype(jnp.bfloat16)   # lane-dense decoder weights
    bdp = _pad2(bd, 1, 128).astype(jnp.float32)

    tmh = _pick_tile(mpad, (512, 256, 128))
    grid = (mpad // tmh,)

    cost = pl.CostEstimate(
        flops=int(mpad * (8 * cp * hd + 2 * hd * n_out + 12 * hd)),
        transcendentals=int(mpad * hd),
        bytes_accessed=int(4 * mpad * cp * 2 + cp * hd * 2 + hd * 4
                           + hd * 128 * 2 + 128 * 4 + mpad * 128 * 4),
    )

    out = pl.pallas_call(
        functools.partial(_head_kernel, slope=slope),
        out_shape=jax.ShapeDtypeStruct((mpad, 128), jnp.float32),
        grid_spec=pltpu.PrefetchScalarGridSpec(
            num_scalar_prefetch=0,
            grid=grid,
            in_specs=[
                pl.BlockSpec((tmh, cp), lambda i: (i, 0)),
                pl.BlockSpec((tmh, cp), lambda i: (i, 0)),
                pl.BlockSpec((tmh, cp), lambda i: (i, 0)),
                pl.BlockSpec((tmh, cp), lambda i: (i, 0)),
                pl.BlockSpec((cp, hd), lambda i: (0, 0)),
                pl.BlockSpec((1, hd), lambda i: (0, 0)),
                pl.BlockSpec((hd, 128), lambda i: (0, 0)),
                pl.BlockSpec((1, 128), lambda i: (0, 0)),
            ],
            out_specs=pl.BlockSpec((tmh, 128), lambda i: (i, 0)),
        ),
        compiler_params=pltpu.CompilerParams(dimension_semantics=("parallel",)),
        cost_estimate=cost,
    )(h1lp, h2lp, h1rp, h2rp, we, be, wdp, bdp)
    return out[:m, :n_out]


# ----------------------------------------------------------------------------
# Plain-JAX glue: dense GCN-normalized adjacency (matches PyG gcn_norm with
# add_self_loops=True), emitted padded + bf16, and the Backbone forward wrapper.
# ----------------------------------------------------------------------------
def build_norm_adj_padded(edge_index, num_nodes, npad):
    src = edge_index[0]
    dst = edge_index[1]
    loop = jnp.arange(num_nodes, dtype=edge_index.dtype)
    src = jnp.concatenate([src, loop])
    dst = jnp.concatenate([dst, loop])
    # A[i, j] = count of edges j -> i (aggregation at target i); padded rows/cols stay 0.
    a = jnp.zeros((npad, npad), jnp.float32).at[dst, src].add(1.0)
    deg = jnp.sum(a, axis=1)
    dinv = jnp.where(deg > 0, 1.0 / jnp.sqrt(deg), 0.0)
    # normalize + cast fused -> single bf16 slab written
    return (dinv[:, None] * a * dinv[None, :]).astype(jnp.bfloat16)


class BackboneParams:
    """Deterministic synthetic parameters for Backbone(in_channels, hidden, k)."""

    def __init__(self, key, in_channels, hidden_channels=512, k=1):
        assert hidden_channels % 128 == 0, "hidden_channels must be a multiple of 128"
        # TODO(synk): support non-128-multiple hidden via masked softmax in the head.
        k1, k2, k3, k4 = jax.random.split(key, 4)
        self.k = k
        # SGConv's internal Linear(in_channels, hidden_channels)
        self.w_enc = (
            jax.random.normal(k1, (in_channels, hidden_channels), jnp.float32) * 0.1
        )
        self.b_enc = jax.random.normal(k2, (1, hidden_channels), jnp.float32) * 0.1
        # decoder: Linear(hidden_channels, 4)   (fusion 'minus' => hidden unchanged)
        self.w_dec = jax.random.normal(k3, (hidden_channels, 4), jnp.float32) * 0.1
        self.b_dec = jax.random.normal(k4, (1, 4), jnp.float32) * 0.1


def backbone_forward(params, x, edge_index1, edge_index2, modified):
    n, c = x.shape
    hd = params.w_enc.shape[1]
    npad = _round_up(max(n, 8), 128)
    cp = _round_up(max(c, 1), 128)

    s1 = build_norm_adj_padded(edge_index1, n, npad)   # bf16 (npad, npad)
    s2 = build_norm_adj_padded(edge_index2, n, npad)
    s = jnp.stack([s1, s2])                            # (2, npad, npad)

    xp = _pad2(x, npad, cp).astype(jnp.bfloat16)
    h = jnp.stack([xp, xp])                            # (2, npad, cp)

    # K propagation steps: SGConv == Linear(S^K x); run as K tiled stacked passes.
    # TODO(synk): keep S VMEM-resident across K>1 steps when 2*N^2 bf16 fits VMEM.
    for _ in range(params.k):
        h = _propagate_stacked(s, h)

    # Gather only the 2M rows consumed downstream (bf16, tiny compared to full graph).
    # TODO(synk): jnp.take clamps out-of-range 'modified' indices instead of raising.
    h1, h2 = h[0], h[1]
    h1l = jnp.take(h1, modified[0], axis=0)
    h2l = jnp.take(h2, modified[0], axis=0)
    h1r = jnp.take(h1, modified[1], axis=0)
    h2r = jnp.take(h2, modified[1], axis=0)

    w_enc = _pad2(params.w_enc, cp, hd).astype(jnp.bfloat16)
    b_enc = params.b_enc.astype(jnp.float32)

    # Shared encoder Linear + LeakyReLU + 'minus' fusion + softmax + decoder, fused.
    t_hat = _head(h1l, h2l, h1r, h2r, w_enc, b_enc,
                  params.w_dec, params.b_dec, slope=0.1)       # [M, 4]
    return t_hat


if __name__ == "__main__":
    key = jax.random.PRNGKey(0)
    k_x, k_e1, k_e2, k_mod, k_par = jax.random.split(key, 5)

    N, C_IN, HIDDEN, K, E, M = 16, 8, 128, 1, 24, 8

    x = jax.random.normal(k_x, (N, C_IN), jnp.float32)
    edge_index1 = jax.random.randint(k_e1, (2, E), 0, N, dtype=jnp.int32)
    edge_index2 = jax.random.randint(k_e2, (2, E), 0, N, dtype=jnp.int32)
    modified = jax.random.randint(k_mod, (2, M), 0, N, dtype=jnp.int32)

    params = BackboneParams(k_par, in_channels=C_IN, hidden_channels=HIDDEN, k=K)

    t_hat = backbone_forward(params, x, edge_index1, edge_index2, modified)
    jax.block_until_ready(t_hat)

    assert t_hat.shape == (M, 4) and t_hat.dtype == jnp.float32
    assert bool(jnp.all(jnp.isfinite(t_hat)))
    print("KERNEL_OK")
</pallas_src>

<mosaic_0001>
module attributes {stable_mosaic.version = 11 : i64} {
  func.func @_propagate_kernel(%arg0: i32, %arg1: i32, %arg2: i32, %arg3: memref<1x128x128xbf16, #tpu.memory_space<vmem>>, %arg4: memref<1x128x128xbf16, #tpu.memory_space<vmem>>, %arg5: memref<1x128x128xbf16, #tpu.memory_space<vmem>>, %arg6: memref<128x128xf32, #tpu.memory_space<vmem>>) attributes {dimension_semantics = [#tpu.dimension_semantics<parallel>, #tpu.dimension_semantics<parallel>, #tpu.dimension_semantics<arbitrary>], iteration_bounds = array<i64: 2, 1, 1>, scalar_prefetch = 0 : i64, scratch_operands = 1 : i64, tpu.core_type = #tpu.core_type<tc>, window_params = [{transform_indices = @transform_0, window_bounds = array<i64: 1, 128, 128>}, {transform_indices = @transform_1, window_bounds = array<i64: 1, 128, 128>}, {transform_indices = @transform_2, window_bounds = array<i64: 1, 128, 128>}]} {
    %c0_i32 = arith.constant 0 : i32
    %0 = arith.cmpi eq, %arg2, %c0_i32 : i32
    %1 = arith.extui %0 : i1 to i32
    %c0_i32_0 = arith.constant 0 : i32
    %2 = arith.cmpi ne, %1, %c0_i32_0 : i32
    scf.if %2 {
      %cst_11 = arith.constant 0.000000e+00 : f32
      %17 = vector.broadcast %cst_11 : f32 to vector<128x128xf32>
      %c0_12 = arith.constant 0 : index
      %c0_13 = arith.constant 0 : index
      %18 = vector.load %arg6[%c0_12, %c0_13] : memref<128x128xf32, #tpu.memory_space<vmem>>, vector<128x128xf32>
      tpu.vector_store %arg6[%c0_12, %c0_13], %17 {strides = array<i32>} : memref<128x128xf32, #tpu.memory_space<vmem>>, vector<128x128xf32>,
    } else {
    }
    %c128_i32 = arith.constant 128 : i32
    %3 = arith.muli %arg2, %c128_i32 : i32
    %4 = tpu.assume_multiple %3, 128 : i32
    %c0 = arith.constant 0 : index
    %c0_1 = arith.constant 0 : index
    %5 = vector.load %arg6[%c0, %c0_1] : memref<128x128xf32, #tpu.memory_space<vmem>>, vector<128x128xf32>
    %c0_2 = arith.constant 0 : index
    %c0_3 = arith.constant 0 : index
    %c0_4 = arith.constant 0 : index
    %6 = vector.load %arg3[%c0_2, %c0_3, %c0_4] : memref<1x128x128xbf16, #tpu.memory_space<vmem>>, vector<1x128x128xbf16>
    %7 = vector.shape_cast %6 : vector<1x128x128xbf16> to vector<128x128xbf16>
    %c0_5 = arith.constant 0 : index
    %8 = arith.index_cast %4 : i32 to index
    %c0_6 = arith.constant 0 : index
    %9 = vector.load %arg4[%c0_5, %8, %c0_6] : memref<1x128x128xbf16, #tpu.memory_space<vmem>>, vector<1x128x128xbf16>
    %10 = vector.shape_cast %9 : vector<1x128x128xbf16> to vector<128x128xbf16>
    %cst = arith.constant dense<0.000000e+00> : vector<128x128xf32>
    %11 = tpu.matmul %7, %10, %cst {dimension_numbers = #tpu.dot_dimension_numbers<[1], [0], [0], [1], [0, 0, 1, 1], [], []>} : vector<128x128xbf16>, vector<128x128xbf16>, vector<128x128xf32> -> vector<128x128xf32>
    %12 = arith.addf %5, %11 : vector<128x128xf32>
    %c0_7 = arith.constant 0 : index
    %c0_8 = arith.constant 0 : index
    %13 = vector.load %arg6[%c0_7, %c0_8] : memref<128x128xf32, #tpu.memory_space<vmem>>, vector<128x128xf32>
    tpu.vector_store %arg6[%c0_7, %c0_8], %12 {strides = array<i32>} : memref<128x128xf32, #tpu.memory_space<vmem>>, vector<128x128xf32>,
    %c0_i32_9 = arith.constant 0 : i32
    %14 = arith.cmpi eq, %arg2, %c0_i32_9 : i32
    %15 = arith.extui %14 : i1 to i32
    %c0_i32_10 = arith.constant 0 : i32
    %16 = arith.cmpi ne, %15, %c0_i32_10 : i32
    scf.if %16 {
      %c0_11 = arith.constant 0 : index
      %c0_12 = arith.constant 0 : index
      %17 = vector.load %arg6[%c0_11, %c0_12] : memref<128x128xf32, #tpu.memory_space<vmem>>, vector<128x128xf32>
      %18 = arith.truncf %17 : vector<128x128xf32> to vector<128x128xbf16>
      %c0_13 = arith.constant 0 : index
      %c0_14 = arith.constant 0 : index
      %c0_15 = arith.constant 0 : index
      %19 = vector.load %arg5[%c0_13, %c0_14, %c0_15] : memref<1x128x128xbf16, #tpu.memory_space<vmem>>, vector<1x128x128xbf16>
      %20 = vector.shape_cast %19 : vector<1x128x128xbf16> to vector<128x128xbf16>
      %21 = vector.shape_cast %18 : vector<128x128xbf16> to vector<1x128x128xbf16>
      tpu.vector_store %arg5[%c0_13, %c0_14, %c0_15], %21 {strides = array<i32>} : memref<1x128x128xbf16, #tpu.memory_space<vmem>>, vector<1x128x128xbf16>,
    } else {
    }
    return
  }
  func.func @transform_0(%arg0: i32, %arg1: i32, %arg2: i32) -> (i32, i32, i32) {
    %c0_i32 = arith.constant 0 : i32
    return %arg0, %arg1, %arg2 : i32, i32, i32
  }
  func.func @transform_1(%arg0: i32, %arg1: i32, %arg2: i32) -> (i32, i32, i32) {
    %c0_i32 = arith.constant 0 : i32
    %c0_i32_0 = arith.constant 0 : i32
    %c0_i32_1 = arith.constant 0 : i32
    return %arg0, %c0_i32, %c0_i32_0 : i32, i32, i32
  }
  func.func @transform_2(%arg0: i32, %arg1: i32, %arg2: i32) -> (i32, i32, i32) {
    %c0_i32 = arith.constant 0 : i32
    %c0_i32_0 = arith.constant 0 : i32
    return %arg0, %arg1, %c0_i32 : i32, i32, i32
  }
}

</mosaic_0001>

<bundles_post_ra>
// kernel: tpu_custom_call.1
= control target key start
LH: loop header
LB: loop body
LE: loop exit
PB: predicated region body
PF: predicated region fallthrough
CT: control target
= control target key end

     0   :  { %7 = vsyncpa [#allocation4], 0  ;;  %s1461_s0 = inlined_call_operand.hbm [shape: bf16[2,128,128], index: 0, kind: input, shape index: {}]   ;;  %s1462_s1 = inlined_call_operand.hbm [shape: bf16[2,128,128], index: 1, kind: input, shape index: {}]   ;;  %s1463_s2 = inlined_call_operand.hbm [shape: bf16[2,128,128], index: 2, kind: output, shape index: {}]  }
   0x1   :  { %9 = vsyncpa [#allocation4 + $0x1], 0 }
   0x2   :  { %10 = vsyncpa [#allocation7], 0 }
   0x3   :  { %12 = vsyncpa [#allocation7 + $0x1], 0 }
   0x4   :  { %13 = vsyncpa [#allocation5], 0 }
   0x5   :  { %15 = vsyncpa [#allocation5 + $0x1], 0  ;;  %s1200_s9 = smov 0   ;;  %s1202_s10 = smov 0  }
   0x6   :  { %s1204_s11 = smov 0   ;;  %s1206_s12 = smov 0  }
   0x7   :  { %s1208_s13 = smov 0   ;;  %s1210_s14 = smov 0  }
   0x8 LB: > { %s762_s15 = sadd.s32 4294967295, %s1176_s14   ;;  %s763_s16 = sadd.s32 4294967294, %s1176_s14   ;;  %s1176_s14 = sphi %s1210_s14, %s21_s14   ;;  %s1172_s13 = sphi %s1208_s13, %s1481_s13   ;;  %s1168_s12 = sphi %s1206_s12, %s1480_s12   ;;  %s1164_s11 = sphi %s1204_s11, %s1479_s11   ;;  %s1160_s10 = sphi %s1202_s10, %s1478_s10   ;;  %s1156_s9 = sphi %s1200_s9, %s1477_s9  }
   0x9   : > { %s40_s17 = sadd.s32 1, %s1172_s13  ;;  %s51_s18 = sadd.s32 1, %s1164_s11 }
   0xa   : > { %p42_p0 = scmp.ge.s32.totalorder %s40_s17, 2  ;;  %p58_p1 = scmp.ne.s32.totalorder %s1164_s11, %s1160_s10 }
   0xb   : > { %p59_p2 = scmp.eq.s32.totalorder %s1176_s14, 0  ;;  %p64_p3 = scmp.ne.s32.totalorder %s1160_s10, %s1156_s9 }
   0xc   : > { %s1483_s17 = smov (%p42_p0, %s40_s17), 0  ;;  %p65_p5 = scmp.eq.s32.totalorder %s762_s15, 0 }
   0xd   : > { %p1241_p4 = por %p59_p2, %p58_p1  ;;  %s44_s20 = ssub.s32 %s1172_s13, %s1483_s17 }
   0xe   : > { %p116_p6 = scmp.eq.s32.totalorder %s762_s15, 1  ;;  %p49_p7 = scmp.eq.s32.totalorder %s44_s20, 0 }
   0xf   : > { %p1247_p8 = por %p65_p5, %p64_p3  ;;  %p122_p10 = scmp.eq.s32.totalorder %s763_s16, 1 }
  0x10   : > { %p1251_p9 = por %p116_p6, %p58_p1  ;;  %p960_p13 = scmp.lt.s32.totalorder %s1176_s14, 2 }
  0x11   : > { %s1467_s21 = scalar_select %p1247_p8, 1, 0 }
  0x12   : > { %s1468_s22 = scalar_select %p1251_p9, 1, 0 }
  0x13   : > { %s1256_s23 = scalar_select %p49_p7, %s1164_s11, %s51_s18  }
  0x14   : > { %p1258_p11 = por %p122_p10, %p64_p3  ;;  %s1265_s25 = sand.u32 1, %s1164_s11  }
  0x15   : > { %s766_s26 = sshll.u32 %s1265_s25, 6  ;;  %s813_s27 = sshll.u32 %s1172_s13, 10 }
  0x16   : > { %s1469_s24 = scalar_select %p1258_p11, 1, 0 }
  0x17   : > { %s1274_s30 = scalar_lea.hbm %s1461_s0, %s813_s27  ;;  %s146_s3 = scalar_lea.vmem [#allocation3], %s766_s26 }
  0x18   : > { %s156_s4 = sshll.u32 %s146_s3, 4  ;;  %p1282_p0 = pnand %p960_p13, %p1241_p4  ;;  %s1278_s4 = int_to_ptr.vmem [resolvable:$true] %s156_s4 }
  0x19   : > { %s143_s6 = scalar_lea.sflag [#allocation4], %s1265_s25  ;;  %s1030_s7 = scalar_lea.hbm %s1274_s30, 1024 }
  0x1a   : > { %p1031_p2 = scmp.ne.s32.totalorder %s1274_s30, %s1030_s7  ;;  %p1032_p3 = pneg %p1282_p0 }
  0x1b   : > { %s1035_s16 = scalar_lea.hbm %s1461_s0, 2048  ;;  %p1036_p4 = scmp.lt.u32.totalorder %s1274_s30, %s1461_s0 }
  0x1c   : > { %p1033_p5 = pnand %p1032_p3, %p1031_p2  ;;  %p1037_p7 = scmp.lt.u32.totalorder %s1035_s16, %s1030_s7 }
  0x1d   : > { %p1039_p13 = scmp.lt.u32.totalorder %s1030_s7, %s1274_s30 }
  0x1e   : > { %p1034_p6 = pneg %p1033_p5  ;;  %p1038_p10 = por %p1037_p7, %p1036_p4 }
  0x20   : > { %p1040_p12 = por %p1039_p13, %p1038_p10 }
  0x22   : > { %p1041_p1 = pnand %p1040_p12, %p1034_p6 }
  0x24   : > { %1044 = shalt.err (!%p1041_p1)
}
  0x25   : > { %s1045_s20 = scalar_lea.vmem %s1278_s4, 1024  ;;  %s1178_s28 = smov [#allocation3]  }
  0x26   : > { %p1046_p2 = scmp.ne.s32.totalorder %s1278_s4, %s1045_s20  ;;  %s1050_s29 = sshll.u32 %s1178_s28, 4  ;;  %s1051_s29 = int_to_ptr.vmem [resolvable:$false] %s1050_s29 }
  0x27   : > { %s1052_s3 = scalar_lea.vmem %s1051_s29, 2048  ;;  %p1053_p9 = scmp.lt.s32.totalorder %s1278_s4, %s1051_s29 }
  0x28   : > { %p1048_p5 = pnand %p1046_p2, %p1032_p3  ;;  %p1054_p4 = scmp.lt.s32.totalorder %s1052_s3, %s1045_s20 }
  0x2a   : > { %p1049_p11 = pneg %p1048_p5  ;;  %p1055_p7 = por %p1054_p4, %p1053_p9 }
  0x2c   : > { %p1056_p10 = pnand %p1055_p7, %p1049_p11 }
  0x2e   : > { %1059 = shalt.err (!%p1056_p10)
}
  0x2f   : > { %s1179_s7 = smov 64   ;;  %s1180_s8 = smov 4  }
  0x30   : > { %952 = dma.hbm_to_vmem [thread:$0]  (!%p1282_p0), %s1274_s30, 1024, %s1278_s4, %s143_s6, %s1179_s7, %s1179_s7, %s1180_s8  }
  0x31   : > { %p185_p9 = scmp.lt.s32.totalorder %s1176_s14, 3  ;;  %s1324_s18 = scalar_lea.hbm %s1462_s1, %s813_s27 }
  0x32   : > { %p1471_p11 = scmp.ge.s32.totalorder %s1176_s14, 1  ;;  %s170_s20 = scalar_lea.vmem [#allocation6], %s766_s26 }
  0x33   : > { %s177_s28 = sshll.u32 %s170_s20, 4  ;;  %s167_s30 = scalar_lea.sflag [#allocation7], %s1265_s25  ;;  %s1334_s28 = int_to_ptr.vmem [resolvable:$true] %s177_s28 }
  0x34   : > { %p1328_p12 = pnand %p1471_p11, %p185_p9  ;;  %s1060_s4 = scalar_lea.hbm %s1324_s18, 1024 }
  0x35   : > { %p1061_p1 = scmp.ne.s32.totalorder %s1324_s18, %s1060_s4  ;;  %s1065_s29 = scalar_lea.hbm %s1462_s1, 2048 }
  0x36   : > { %p1066_p2 = scmp.lt.u32.totalorder %s1324_s18, %s1462_s1  ;;  %p1067_p5 = scmp.lt.u32.totalorder %s1065_s29, %s1060_s4 }
  0x37   : > { %p1063_p6 = pnand %p1061_p1, %p1032_p3  ;;  %p1069_p7 = scmp.lt.u32.totalorder %s1060_s4, %s1324_s18 }
  0x38   : > { %p1068_p4 = por %p1067_p5, %p1066_p2 }
  0x39   : > { %p1064_p13 = pneg %p1063_p6 }
  0x3a   : > { %p1070_p10 = por %p1069_p7, %p1068_p4 }
  0x3c   : > { %p1071_p9 = pnand %p1070_p10, %p1064_p13 }
  0x3e   : > { %1074 = shalt.err (!%p1071_p9)
}
  0x3f   : > { %s1075_s26 = scalar_lea.vmem %s1334_s28, 1024  ;;  %s1181_s16 = smov [#allocation6]  }
  0x40   : > { %p1076_p11 = scmp.ne.s32.totalorder %s1334_s28, %s1075_s26  ;;  %s1080_s20 = sshll.u32 %s1181_s16, 4  ;;  %s1081_s20 = int_to_ptr.vmem [resolvable:$false] %s1080_s20 }
  0x41   : > { %s1082_s27 = scalar_lea.vmem %s1081_s20, 2048  ;;  %p1083_p8 = scmp.lt.s32.totalorder %s1334_s28, %s1081_s20 }
  0x42   : > { %p1078_p1 = pnand %p1076_p11, %p1032_p3  ;;  %p1084_p2 = scmp.lt.s32.totalorder %s1082_s27, %s1075_s26 }
  0x44   : > { %p1079_p6 = pneg %p1078_p1  ;;  %p1085_p5 = por %p1084_p2, %p1083_p8 }
  0x46   : > { %p1086_p4 = pnand %p1085_p5, %p1079_p6 }
  0x48   : > { %1089 = shalt.err (!%p1086_p4)
}
  0x49   : > { %955 = dma.hbm_to_vmem [thread:$0]  (!%p1282_p0), %s1324_s18, 1024, %s1334_s28, %s167_s30, %s1179_s7, %s1179_s7, %s1180_s8  }
  0x4a   : > { %189 = sbr.rel (%p1328_p12) target bundleno = 357 (0x165), region = 28  ;;  %s1368_s4 = sand.u32 (!%p1328_p12), 1, %s1160_s10  }
  0x4b   : > { %s1371_s6 = sshll.u32 (!%p1328_p12), %s1368_s4, 6  ;;  %s192_s5 = scalar_lea.sflag (!%p1328_p12), [#allocation4], %s1368_s4 }
  0x4c   : > { %s1375_s29 = scalar_lea.vmem (!%p1328_p12), [#allocation3], %s1371_s6  ;;  %p1473_p8 = scmp.ne.s32.totalorder (!%p1328_p12), %s1467_s21, 0 }
  0x51   : > { %1143 = dma.done.wait (%p1473_p8), %s192_s5, 1024  }
  0x52   : > { %1145 = vsyncadd (%p1473_p8), %s192_s5, 4294966272  ;;  %s201_s25 = scalar_lea.sflag [#allocation7], %s1368_s4  ;;  %s1383_s7 = scalar_lea.vmem [#allocation6], %s1371_s6 }
  0x53   : > { %1147 = dma.done.wait (%p1473_p8), %s201_s25, 1024  }
  0x54   : > { %1149 = vsyncadd (%p1473_p8), %s201_s25, 4294966272  ;;  %v1014_v0 = vld [vmem:[%s1383_s7] sm:$0xff]   ;;  %v1015_v1 = vld [vmem:[%s1383_s7 + $0x8] sm:$0xff]   ;;  %s229_s21 = scalar_lea.vmem [#allocation8], %s1371_s6  ;;  %s831_s18 = sshll.u32 %s1168_s12, 10 }
  0x55   : > { %895 = vmatprep.subr.bf16.mxu0 %v1014_v0  ;;  %927 = vmatprep.subr.bf16.mxu1 %v1014_v0  ;;  %v1016_v2 = vld [vmem:[%s1383_s7 + $0x10] sm:$0xff]   ;;  %v1017_v3 = vld [vmem:[%s1383_s7 + $0x18] sm:$0xff]   ;;  %v1022_v4 = vld [vmem:[%s1375_s29] sm:$0xff]   ;;  %s646_s8 = sshll.u32 %s229_s21, 4  ;;  %s1412_s30 = scalar_lea.hbm %s1463_s2, %s831_s18  ;;  %s1407_s8 = int_to_ptr.vmem [resolvable:$true] %s646_s8 }
  0x56   : > { %896 = vmatpush3.bf16.msra.mxu0 %v1014_v0  ;;  %935 = vmatpush3.bf16.msra.mxu1 %v1014_v0  ;;  %v1023_v5 = vld [vmem:[%s1375_s29 + $0x20] sm:$0xff]   ;;  %v1019_v7 = vld [vmem:[%s1383_s7 + $0x28] sm:$0xff]   ;;  %v1020_v8 = vld [vmem:[%s1383_s7 + $0x30] sm:$0xff]   ;;  %s631_s12 = scalar_lea.sflag [#allocation5], %s1368_s4  ;;  %s1090_s3 = scalar_lea.vmem %s1407_s8, 1024 }
  0x57   : > { %897 = vmatprep.subr.bf16.mxu0 %v1015_v1  ;;  %928 = vmatprep.subr.bf16.mxu1 %v1015_v1  ;;  %v1018_v6 = vld [vmem:[%s1383_s7 + $0x20] sm:$0xff]   ;;  %v1021_v9 = vld [vmem:[%s1383_s7 + $0x38] sm:$0xff]   ;;  %v1024_v10 = vld [vmem:[%s1375_s29 + $0x8] sm:$0xff]   ;;  %p1091_p0 = scmp.ne.s32.totalorder %s1407_s8, %s1090_s3  ;;  %p1474_p3 = scmp.ne.s32.totalorder %s1468_s22, 0 }
  0x58   : > { %911 = vmatprep.mubr.bf16.mxu0 %v1022_v4  ;;  %919 = vmatprep.mubr.bf16.mxu1 %v1023_v5  ;;  %v1025_v11 = vld [vmem:[%s1375_s29 + $0x28] sm:$0xff]   ;;  %v1026_v12 = vld [vmem:[%s1375_s29 + $0x10] sm:$0xff]   ;;  %v1028_v14 = vld [vmem:[%s1375_s29 + $0x18] sm:$0xff]   ;;  %s1182_s15 = smov [#allocation8]  }
  0x59   : > { %v1027_v13 = vld [vmem:[%s1375_s29 + $0x30] sm:$0xff]   ;;  %v1029_v15 = vld [vmem:[%s1375_s29 + $0x38] sm:$0xff]   ;;  %p1092_p12 = pnand %p1091_p0, %p1474_p3  ;;  %s1094_s26 = sshll.u32 %s1182_s15, 4  ;;  %s1095_s26 = int_to_ptr.vmem [resolvable:$false] %s1094_s26 }
  0x5a   : > { %898 = vmatpush3.bf16.msra.mxu0 %v1015_v1  ;;  %936 = vmatpush3.bf16.msra.mxu1 %v1015_v1  ;;  %s1096_s16 = scalar_lea.vmem %s1095_s26, 2048  ;;  %p1097_p7 = scmp.lt.s32.totalorder %s1407_s8, %s1095_s26 }
  0x5b   : > { %899 = vmatprep.subr.bf16.mxu0 %v1016_v2  ;;  %929 = vmatprep.subr.bf16.mxu1 %v1016_v2  ;;  %p1093_p13 = pneg %p1092_p12  ;;  %p1098_p10 = scmp.lt.s32.totalorder %s1096_s16, %s1090_s3 }
  0x5d   : > { %p1099_p9 = por %p1098_p10, %p1097_p7 }
  0x5e   : > { %900 = vmatpush3.bf16.msra.mxu0 %v1016_v2  ;;  %937 = vmatpush3.bf16.msra.mxu1 %v1016_v2 }
  0x5f   : > { %901 = vmatprep.subr.bf16.mxu0 %v1017_v3  ;;  %930 = vmatprep.subr.bf16.mxu1 %v1017_v3  ;;  %p1100_p11 = pnand %p1099_p9, %p1093_p13 }
  0x62   : > { %902 = vmatpush3.bf16.msra.mxu0 %v1017_v3  ;;  %938 = vmatpush3.bf16.msra.mxu1 %v1017_v3 }
  0x63   : > { %903 = vmatprep.subr.bf16.mxu0 %v1018_v6  ;;  %931 = vmatprep.subr.bf16.mxu1 %v1018_v6 }
  0x66   : > { %904 = vmatpush3.bf16.msra.mxu0 %v1018_v6  ;;  %939 = vmatpush3.bf16.msra.mxu1 %v1018_v6 }
  0x67   : > { %905 = vmatprep.subr.bf16.mxu0 %v1019_v7  ;;  %932 = vmatprep.subr.bf16.mxu1 %v1019_v7 }
  0x6a   : > { %906 = vmatpush3.bf16.msra.mxu0 %v1019_v7  ;;  %940 = vmatpush3.bf16.msra.mxu1 %v1019_v7 }
  0x6b   : > { %907 = vmatprep.subr.bf16.mxu0 %v1020_v8  ;;  %933 = vmatprep.subr.bf16.mxu1 %v1020_v8 }
  0x6e   : > { %908 = vmatpush3.bf16.msra.mxu0 %v1020_v8  ;;  %941 = vmatpush3.bf16.msra.mxu1 %v1020_v8 }
  0x6f   : > { %909 = vmatprep.subr.bf16.mxu0 %v1021_v9  ;;  %934 = vmatprep.subr.bf16.mxu1 %v1021_v9 }
  0x72   : > { %910 = vmatpush3.bf16.msra.mxu0 %v1021_v9  ;;  %942 = vmatpush3.bf16.msra.mxu1 %v1021_v9 }
  0x75   : > { %912 = vmatmul.mubr.bf16.vlgmr.msra.gmra.mrb[0].mxu0 %v1024_v10  ;;  %920 = vmatmul.mubr.bf16.vlgmr.msra.gmra.mrb[0].mxu1 %v1025_v11 }
  0x76   : > { %915 = vmatprep.mubr.bf16.mxu0 %v1026_v12  ;;  %923 = vmatprep.mubr.bf16.mxu1 %v1027_v13 }
  0x7d   : > { %916 = vmatmul.mubr.bf16.gmra.mrb[4].mxu0 %v1028_v14  ;;  %924 = vmatmul.mubr.bf16.gmra.mrb[4].mxu1 %v1029_v15 }
 0x148   : > { %v913_v16 = vpop.f32.mrb[0].mxu0  ;;  %v921_v17 = vpop.f32.mrb[0].mxu1 }
 0x149   : > { %v436_v18 = vpop.f32.mrb[1].mxu0  ;;  %v468_v19 = vpop.f32.mrb[1].mxu1 }
 0x14a   : > { %v914_v20 = vpop.f32.mrb[2].mxu0  ;;  %v922_v21 = vpop.f32.mrb[2].mxu1 }
 0x14b   : > { %v840_v22 = vpack.c.bf16 %v914_v20, %v913_v16  ;;  %v860_v23 = vpack.c.bf16 %v922_v21, %v921_v17  ;;  %v439_v24 = vpop.f32.mrb[3].mxu0  ;;  %v471_v25 = vpop.f32.mrb[3].mxu1 }
 0x14c   : > { %v835_v26 = vpack.c.bf16 %v439_v24, %v436_v18  ;;  %v855_v27 = vpack.c.bf16 %v471_v25, %v468_v19 }
 0x14d   : > { %872 = vst [vmem:[%s229_s21 + $0x8] sm:$0xff] %v840_v22   ;;  %876 = vst [vmem:[%s229_s21 + $0x28] sm:$0xff] %v860_v23  }
 0x14e   : > { %836 = vst [vmem:[%s229_s21] sm:$0xff] %v835_v26   ;;  %875 = vst [vmem:[%s229_s21 + $0x20] sm:$0xff] %v855_v27  }
 0x150   : > { %v917_v28 = vpop.f32.mrb[4].mxu0  ;;  %v925_v29 = vpop.f32.mrb[4].mxu1 }
 0x151   : > { %v452_v30 = vpop.f32.mrb[5].mxu0  ;;  %v484_v31 = vpop.f32.mrb[5].mxu1 }
 0x152   : > { %v918_v32 = vpop.f32.mrb[6].mxu0  ;;  %v926_v33 = vpop.f32.mrb[6].mxu1 }
 0x153   : > { %v850_v34 = vpack.c.bf16 %v918_v32, %v917_v28  ;;  %v870_v35 = vpack.c.bf16 %v926_v33, %v925_v29  ;;  %v455_v36 = vpop.f32.mrb[7].mxu0  ;;  %v487_v37 = vpop.f32.mrb[7].mxu1 }
 0x154   : > { %v845_v38 = vpack.c.bf16 %v455_v36, %v452_v30  ;;  %v865_v39 = vpack.c.bf16 %v487_v37, %v484_v31 }
 0x155   : > { %874 = vst [vmem:[%s229_s21 + $0x18] sm:$0xff] %v850_v34   ;;  %878 = vst [vmem:[%s229_s21 + $0x38] sm:$0xff] %v870_v35  }
 0x156   : > { %873 = vst [vmem:[%s229_s21 + $0x10] sm:$0xff] %v845_v38   ;;  %877 = vst [vmem:[%s229_s21 + $0x30] sm:$0xff] %v865_v39  }
 0x157   : > { %1103 = shalt.err (!%p1100_p11)
}
 0x158   : > { %s1104_s20 = scalar_lea.hbm %s1412_s30, 1024  ;;  %s1108_s5 = scalar_lea.hbm %s1463_s2, 2048 }
 0x159   : > { %p1105_p1 = scmp.ne.s32.totalorder %s1412_s30, %s1104_s20  ;;  %p1109_p5 = scmp.lt.u32.totalorder %s1412_s30, %s1463_s2 }
 0x15a   : > { %p1110_p4 = scmp.lt.u32.totalorder %s1108_s5, %s1104_s20  ;;  %p1112_p0 = scmp.lt.u32.totalorder %s1104_s20, %s1412_s30 }
 0x15b   : > { %p1106_p6 = pnand %p1105_p1, %p1474_p3 }
 0x15c   : > { %p1111_p8 = por %p1110_p4, %p1109_p5 }
 0x15d   : > { %p1107_p2 = pneg %p1106_p6 }
 0x15e   : > { %p1113_p12 = por %p1112_p0, %p1111_p8 }
 0x160   : > { %p1114_p13 = pnand %p1113_p12, %p1107_p2 }
 0x162   : > { %1117 = shalt.err (!%p1114_p13)
}
 0x163   : > { %s1183_s7 = smov 64   ;;  %s1184_s21 = smov 4  }
 0x164   : > { %947 = dma.vmem_to_hbm [thread:$0]  (%p1474_p3), %s1407_s8, 1024, %s1412_s30, %s631_s12, %s1183_s7, %s1183_s7, %s1184_s21  }
 0x165 PF: > { %s661_s18 = sand.u32 1, %s1156_s9   ;;  %p1475_p7 = scmp.ne.s32.totalorder %s1469_s24, 0 }
 0x166   : > { %p1476_p10 = scmp.ge.s32.totalorder %s1176_s14, 2  ;;  %s662_s19 = scalar_lea.sflag [#allocation5], %s661_s18 }
 0x168   : > { %p957_p9 = pnand %p1476_p10, %p1475_p7 }
 0x16a   : > { %1151 = dma.done.wait (!%p957_p9), %s662_s19, 1024  }
 0x16b   : > { %1153 = vsyncadd (!%p957_p9), %s662_s19, 4294966272  ;;  %s21_s14 = sadd.s32 1, %s1176_s14   ;;  %s1477_s9 = smov %s1160_s10 }
 0x16c   : > { %p18_p11 = scmp.ge.s32.totalorder %s21_s14, 4   ;;  %s1478_s10 = smov %s1164_s11 }
 0x16d   : > { %s1479_s11 = smov %s1256_s23  ;;  %s1480_s12 = smov %s1172_s13 }
 0x16e   : > { %s1481_s13 = smov %s1483_s17  ;;  %20 = sbr.rel (!%p18_p11) target bundleno = 8 (0x8), region = 95 }
 0x175   :  { %667 = vsyncpa [#allocation4], 1 }
 0x176   :  { %669 = vsyncpa [#allocation4 + $0x1], 1 }
 0x177   :  { %670 = vsyncpa [#allocation7], 1 }
 0x178   :  { %672 = vsyncpa [#allocation7 + $0x1], 1 }
 0x179   :  { %673 = vsyncpa [#allocation5], 1 }
 0x17a   :  { %675 = vsyncpa [#allocation5 + $0x1], 1 }

</bundles_post_ra>
